<compile_context>
chip_gen: v7x
topology: tpu7x:2x2x1
jax: 0.10.0
libtpu: 0.0.40
codegen_flags: <defaults>
</compile_context>

<pallas_src>
import jax
import jax.numpy as jnp
from jax.experimental import pallas as pl
from jax.experimental.pallas import tpu as pltpu


def _proj_relu_kernel(x_ref, w_ref, b_ref, o_ref):
    # x_ref: (TM, K) concatenated frames; w_ref: (K, D) = W^T; b_ref: (1, D) f32
    acc = jnp.dot(x_ref[...], w_ref[...], preferred_element_type=jnp.float32)
    acc = acc + b_ref[...].astype(jnp.float32)       # bias broadcast over rows
    o_ref[...] = jnp.maximum(acc, 0.0).astype(o_ref.dtype)


def _round_up(x, m):
    return ((x + m - 1) // m) * m


def _pick_tm(M, K, D, in_bytes, out_bytes, budget_bytes=40 * 1024 * 1024):
    """Largest M-tile whose double-buffered pipeline fits a conservative VMEM
    budget (sized for v7x's 64 MiB/TC; v5e/v6e have more headroom)."""
    resident = K * D * in_bytes + D * 4               # weight + bias, loaded once
    per_row = 2 * (K * in_bytes + D * out_bytes)      # 2x-buffered in + out
    avail = max(budget_bytes - resident, per_row * 8)
    tm = max(8, avail // per_row)
    tm = min(tm, 1024)
    if tm >= 256:
        tm = (tm // 256) * 256                        # align to MXU 256 tile (v6e/v7x)
    else:
        tm = (tm // 8) * 8                            # sublane alignment
    return int(min(tm, _round_up(M, 8)))


def concat_subsampler(xs, xlens, w_t, b, factor, *, compute_dtype=None):
    """JAX/Pallas equivalent of ConcatSubsampler.forward.

    xs:    (B, T, D) float32
    xlens: (B,) int32
    w_t:   (factor*D, D)  == torch Linear weight transposed
    b:     (D,)
    compute_dtype: None (keep xs dtype) or jnp.bfloat16 (MXU-native, f32 accum)
    """
    if factor == 1:
        return xs, xlens

    B, T, D = xs.shape
    Tp = T // factor                                   # incomplete trailing group dropped
    K = factor * D
    M = B * Tp

    # Grouping `factor` consecutive frames and concatenating along features is
    # exactly a layout-preserving reshape of the time-contiguous rows.
    x_flat = xs[:, : Tp * factor, :].reshape(M, K)
    if compute_dtype is not None:
        x_flat = x_flat.astype(compute_dtype)
        w_t = w_t.astype(compute_dtype)
    b2 = b.reshape(1, D).astype(jnp.float32)

    out_dtype = xs.dtype
    in_bytes = jnp.dtype(x_flat.dtype).itemsize
    out_bytes = jnp.dtype(out_dtype).itemsize

    TM = _pick_tm(M, K, D, in_bytes, out_bytes)
    grid = (pl.cdiv(M, TM),)

    cost = pl.CostEstimate(
        flops=2 * M * K * D,
        transcendentals=0,
        bytes_accessed=M * K * in_bytes + K * D * in_bytes + M * D * out_bytes + D * 4,
    )

    out = pl.pallas_call(
        _proj_relu_kernel,
        out_shape=jax.ShapeDtypeStruct((M, D), out_dtype),
        grid=grid,
        in_specs=[
            pl.BlockSpec((TM, K), lambda i: (i, 0)),   # streamed activation tiles
            pl.BlockSpec((K, D), lambda i: (0, 0)),    # weight: VMEM-resident
            pl.BlockSpec((1, D), lambda i: (0, 0)),    # bias:   VMEM-resident
        ],
        out_specs=pl.BlockSpec((TM, D), lambda i: (i, 0)),
        compiler_params=pltpu.CompilerParams(
            dimension_semantics=("parallel",),         # shard M tiles over v7x's 2 TCs
            vmem_limit_bytes=64 * 1024 * 1024,
        ),
        cost_estimate=cost,
    )(x_flat, w_t, b2)

    out = out.reshape(B, Tp, D)
    new_xlens = xlens // factor
    return out, new_xlens


def _reference(xs, xlens, w_t, b, factor):
    """Pure-JAX reference mirroring the PyTorch code."""
    if factor == 1:
        return xs, xlens
    B, T, D = xs.shape
    Tp = T // factor
    x = xs[:, : Tp * factor, :].reshape(B, Tp, factor * D)
    y = jnp.maximum(x @ w_t + b, 0.0)
    return y, xlens // factor


if __name__ == "__main__":
    key = jax.random.PRNGKey(0)
    B, T, D = 2, 16, 32          # batch, time, n_units
    factor = 4                   # subsampling factor

    k1, k2, k3, k4 = jax.random.split(key, 4)
    xs = jax.random.normal(k1, (B, T, D), dtype=jnp.float32)
    xlens = jnp.array([T, T - 3], dtype=jnp.int32)

    # Deterministic parameter init (shapes from nn.Linear(n_units*factor, n_units)).
    fan_in = D * factor
    bound = 1.0 / (fan_in ** 0.5)
    w = jax.random.uniform(k2, (D, fan_in), jnp.float32, -bound, bound)  # torch weight
    b = jax.random.uniform(k3, (D,), jnp.float32, -bound, bound)
    w_t = w.T                                                            # (factor*D, D)

    # --- f32 path (exact vs reference) ---
    out, out_lens = concat_subsampler(xs, xlens, w_t, b, factor)
    out = jax.block_until_ready(out)
    out_lens = jax.block_until_ready(out_lens)

    ref_out, ref_lens = _reference(xs, xlens, w_t, b, factor)
    assert out.shape == (B, T // factor, D)
    assert jnp.allclose(out, ref_out, atol=1e-5, rtol=1e-5)
    assert jnp.array_equal(out_lens, ref_lens)

    # --- bf16 compute path (compare against bf16-rounded-input f32 reference) ---
    out_bf, lens_bf = concat_subsampler(
        xs, xlens, w_t, b, factor, compute_dtype=jnp.bfloat16)
    out_bf = jax.block_until_ready(out_bf)
    xs_bf = xs.astype(jnp.bfloat16).astype(jnp.float32)
    wt_bf = w_t.astype(jnp.bfloat16).astype(jnp.float32)
    ref_bf, _ = _reference(xs_bf, xlens, wt_bf, b, factor)
    assert out_bf.shape == (B, T // factor, D)
    assert jnp.allclose(out_bf, ref_bf, atol=1e-3, rtol=1e-3)
    assert jnp.array_equal(lens_bf, ref_lens)

    print("KERNEL_OK")
</pallas_src>

<mosaic_0001>
module attributes {stable_mosaic.version = 11 : i64} {
  func.func @_proj_relu_kernel(%arg0: i32, %arg1: memref<8x128xf32, #tpu.memory_space<vmem>>, %arg2: memref<128x32xf32, #tpu.memory_space<vmem>>, %arg3: memref<1x32xf32, #tpu.memory_space<vmem>>, %arg4: memref<8x32xf32, #tpu.memory_space<vmem>>) attributes {dimension_semantics = [#tpu.dimension_semantics<parallel>], iteration_bounds = array<i64: 1>, scalar_prefetch = 0 : i64, scratch_operands = 0 : i64, tpu.core_type = #tpu.core_type<tc>, window_params = [{transform_indices = @transform_0, window_bounds = array<i64: 8, 128>}, {pipeline_mode = #tpu.pipeline_mode<synchronous>, transform_indices = @transform_1, window_bounds = array<i64: 128, 32>}, {pipeline_mode = #tpu.pipeline_mode<synchronous>, transform_indices = @transform_2, window_bounds = array<i64: 1, 32>}, {transform_indices = @transform_3, window_bounds = array<i64: 8, 32>}]} {
    %c0 = arith.constant 0 : index
    %c0_0 = arith.constant 0 : index
    %0 = vector.load %arg1[%c0, %c0_0] : memref<8x128xf32, #tpu.memory_space<vmem>>, vector<8x128xf32>
    %c0_1 = arith.constant 0 : index
    %c0_2 = arith.constant 0 : index
    %1 = vector.load %arg2[%c0_1, %c0_2] : memref<128x32xf32, #tpu.memory_space<vmem>>, vector<128x32xf32>
    %cst = arith.constant dense<0.000000e+00> : vector<8x32xf32>
    %2 = tpu.matmul %0, %1, %cst {dimension_numbers = #tpu.dot_dimension_numbers<[1], [0], [0], [1], [0, 0, 1, 1], [], []>} : vector<8x128xf32>, vector<128x32xf32>, vector<8x32xf32> -> vector<8x32xf32>
    %c0_3 = arith.constant 0 : index
    %c0_4 = arith.constant 0 : index
    %3 = vector.load %arg3[%c0_3, %c0_4] : memref<1x32xf32, #tpu.memory_space<vmem>>, vector<1x32xf32>
    %4 = vector.broadcast %3 : vector<1x32xf32> to vector<8x32xf32>
    %5 = arith.addf %2, %4 : vector<8x32xf32>
    %cst_5 = arith.constant 0.000000e+00 : f32
    %6 = vector.broadcast %cst_5 : f32 to vector<8x32xf32>
    %7 = arith.maximumf %5, %6 : vector<8x32xf32>
    %c0_6 = arith.constant 0 : index
    %c0_7 = arith.constant 0 : index
    %8 = vector.load %arg4[%c0_6, %c0_7] : memref<8x32xf32, #tpu.memory_space<vmem>>, vector<8x32xf32>
    tpu.vector_store %arg4[%c0_6, %c0_7], %7 {strides = array<i32>} : memref<8x32xf32, #tpu.memory_space<vmem>>, vector<8x32xf32>,
    return
  }
  func.func @transform_0(%arg0: i32) -> (i32, i32) {
    %c0_i32 = arith.constant 0 : i32
    %c0_i32_0 = arith.constant 0 : i32
    return %arg0, %c0_i32 : i32, i32
  }
  func.func @transform_1(%arg0: i32) -> (i32, i32) {
    %c0_i32 = arith.constant 0 : i32
    %c0_i32_0 = arith.constant 0 : i32
    %c0_i32_1 = arith.constant 0 : i32
    return %c0_i32, %c0_i32_0 : i32, i32
  }
  func.func @transform_2(%arg0: i32) -> (i32, i32) {
    %c0_i32 = arith.constant 0 : i32
    %c0_i32_0 = arith.constant 0 : i32
    %c0_i32_1 = arith.constant 0 : i32
    return %c0_i32, %c0_i32_0 : i32, i32
  }
  func.func @transform_3(%arg0: i32) -> (i32, i32) {
    %c0_i32 = arith.constant 0 : i32
    %c0_i32_0 = arith.constant 0 : i32
    return %arg0, %c0_i32 : i32, i32
  }
}

</mosaic_0001>

<bundles_post_ra>
// kernel: tpu_custom_call.1
= control target key start
LH: loop header
LB: loop body
LE: loop exit
PB: predicated region body
PF: predicated region fallthrough
CT: control target
= control target key end

     0   :  { %8 = vsyncpa [#allocation3], 0  ;;  %s422_s0 = inlined_call_operand.hbm [shape: f32[8,128], index: 0, kind: input, shape index: {}]   ;;  %s423_s1 = inlined_call_operand.hbm [shape: f32[128,32], index: 1, kind: input, shape index: {}]   ;;  %s424_s2 = inlined_call_operand.hbm [shape: f32[1,32], index: 2, kind: input, shape index: {}]   ;;  %s425_s3 = inlined_call_operand.hbm [shape: f32[8,32], index: 3, kind: output, shape index: {}]  }
   0x1   :  { %9 = vsyncpa [#allocation6], 0 }
   0x2   :  { %10 = vsyncpa [#allocation4], 0  ;;  %s345_s12 = smov [#allocation5]   ;;  %s251_s16 = scalar_lea.hbm %s423_s1, 2048 }
   0x3   :  { %s26_s13 = sshll.u32 %s345_s12, 4  ;;  %p252_p0 = scmp.ne.s32.totalorder %s423_s1, %s251_s16  ;;  %s27_s13 = int_to_ptr.vmem [resolvable:$true] %s26_s13 }
   0x4   :  { %p255_p1 = scmp.lt.u32.totalorder %s251_s16, %s423_s1 }
   0x6   :  { %p257_p2 = pnand %p255_p1, %p252_p0 }
   0x8   :  { %260 = shalt.err (!%p257_p2)
}
   0x9   :  { %s261_s21 = scalar_lea.vmem %s27_s13, 2048  ;;  %p266_p4 = scmp.lt.s32.totalorder %s27_s13, %s27_s13 }
   0xa   :  { %p262_p3 = scmp.ne.s32.totalorder %s27_s13, %s261_s21  ;;  %p267_p5 = scmp.lt.s32.totalorder %s261_s21, %s261_s21 }
   0xc   :  { %p268_p6 = por %p267_p5, %p266_p4 }
   0xe   :  { %p269_p7 = pnand %p268_p6, %p262_p3 }
  0x10   :  { %272 = shalt.err (!%p269_p7)
}
  0x11   :  { %s346_s22 = smov 128   ;;  %s347_s23 = smov 8  }
  0x12   :  { %32 = dma.hbm_to_vmem [thread:$0]  %s423_s1, 2048, %s27_s13, [#allocation6], %s346_s22, %s346_s22, %s347_s23  }
  0x13   :  { %s348_s26 = smov [#allocation2]   ;;  %s349_s28 = smov [#allocation7]  }
  0x14   :  { %s17_s27 = sshll.u32 %s348_s26, 4  ;;  %s39_s29 = sshll.u32 %s349_s28, 4  ;;  %s18_s27 = int_to_ptr.vmem [resolvable:$true] %s17_s27  ;;  %s40_s29 = int_to_ptr.vmem [resolvable:$true] %s39_s29 }
  0x15   :  { %s273_s5 = scalar_lea.hbm %s422_s0, 128 }
  0x16   :  { %p274_p8 = scmp.ne.s32.totalorder %s422_s0, %s273_s5  ;;  %p277_p9 = scmp.lt.u32.totalorder %s273_s5, %s422_s0 }
  0x18   :  { %p279_p10 = pnand %p277_p9, %p274_p8 }
  0x1a   :  { %282 = shalt.err (!%p279_p10)
}
  0x1b   :  { %s283_s1 = scalar_lea.vmem %s18_s27, 128  ;;  %p288_p12 = scmp.lt.s32.totalorder %s18_s27, %s18_s27 }
  0x1c   :  { %p284_p11 = scmp.ne.s32.totalorder %s18_s27, %s283_s1  ;;  %p289_p13 = scmp.lt.s32.totalorder %s283_s1, %s283_s1 }
  0x1e   :  { %p290_p0 = por %p289_p13, %p288_p12 }
  0x20   :  { %p291_p1 = pnand %p290_p0, %p284_p11 }
  0x22   :  { %294 = shalt.err (!%p291_p1)
}
  0x23   :  { %20 = dma.hbm_to_vmem [thread:$0]  %s422_s0, 128, %s18_s27, [#allocation3]  }
  0x24   :  { %s295_s14 = scalar_lea.hbm %s424_s2, 16 }
  0x25   :  { %p296_p2 = scmp.ne.s32.totalorder %s424_s2, %s295_s14  ;;  %p299_p3 = scmp.lt.u32.totalorder %s295_s14, %s424_s2 }
  0x27   :  { %p301_p4 = pnand %p299_p3, %p296_p2 }
  0x29   :  { %304 = shalt.err (!%p301_p4)
}
  0x2a   :  { %s305_s19 = scalar_lea.vmem %s40_s29, 16  ;;  %s309_s20 = scalar_lea.vmem %s40_s29, 32 }
  0x2b   :  { %p306_p5 = scmp.ne.s32.totalorder %s40_s29, %s305_s19  ;;  %p310_p6 = scmp.lt.s32.totalorder %s40_s29, %s40_s29 }
  0x2c   :  { %p311_p7 = scmp.lt.s32.totalorder %s309_s20, %s305_s19 }
  0x2e   :  { %p312_p8 = por %p311_p7, %p310_p6 }
  0x30   :  { %p313_p9 = pnand %p312_p8, %p306_p5 }
  0x32   :  { %316 = shalt.err (!%p313_p9)
}
  0x33   :  { %42 = dma.hbm_to_vmem [thread:$0]  %s424_s2, 16, %s40_s29, [#allocation6]  }
  0x34   :  { %339 = dma.done.wait [#allocation3], 128  }
  0x35   :  { %340 = vsyncadd [#allocation3], 4294967168 }
  0x36   :  { %341 = dma.done.wait [#allocation6], 2064  }
  0x37   :  { %342 = vsyncadd [#allocation6], 4294965232  ;;  %v350_v0 = vmov 0.0|0.0   ;;  %vm351_vm0 = vmmov 0   ;;  %v352_v1 = vmov 0.0   ;;  %v53_v2 = vld [vmem:[#allocation5] sm:$0xff] }
  0x38   :  { %218 = vmatprep.subr.bf16.mxu0 %v350_v0  ;;  %215 = vmatprep.mubr.msk.f32.mxu0 %vm351_vm0, %v352_v1  ;;  %v54_v3 = vld [vmem:[#allocation5 + $0x8] sm:$0xff]  ;;  %v55_v4 = vld [vmem:[#allocation5 + $0x10] sm:$0xff]  ;;  %v56_v6 = vld [vmem:[#allocation5 + $0x18] sm:$0xff]  ;;  %s353_s2 = smov [#allocation8]   ;;  %vm147_vm1 = vcmask 261120  }
  0x39   :  { %v219_v5 = vpack.c.bf16 %v54_v3, %v53_v2  ;;  %v222_v7 = vpack.c.bf16 %v56_v6, %v55_v4  ;;  %v57_v8 = vld [vmem:[#allocation5 + $0x20] sm:$0xff]  ;;  %v58_v9 = vld [vmem:[#allocation5 + $0x28] sm:$0xff]  ;;  %v59_v11 = vld [vmem:[#allocation5 + $0x30] sm:$0xff]  ;;  %s155_s22 = sshll.u32 %s353_s2, 4  ;;  %s156_s22 = int_to_ptr.vmem [resolvable:$true] %s155_s22 }
  0x3a   :  { %v225_v10 = vpack.c.bf16 %v58_v9, %v57_v8  ;;  %v60_v12 = vld [vmem:[#allocation5 + $0x38] sm:$0xff]  ;;  %v61_v14 = vld [vmem:[#allocation5 + $0x40] sm:$0xff]  ;;  %v62_v15 = vld [vmem:[#allocation5 + $0x48] sm:$0xff]  ;;  %s317_s23 = scalar_lea.vmem %s156_s22, 128  ;;  %p322_p11 = scmp.lt.s32.totalorder %s156_s22, %s156_s22 }
  0x3b   :  { %220 = vmatpush3.bf16.msra.mxu0 %v219_v5  ;;  %v228_v13 = vpack.c.bf16 %v60_v12, %v59_v11  ;;  %v231_v16 = vpack.c.bf16 %v62_v15, %v61_v14  ;;  %v63_v17 = vld [vmem:[#allocation5 + $0x50] sm:$0xff]  ;;  %v64_v18 = vld [vmem:[#allocation5 + $0x58] sm:$0xff]  ;;  %v65_v20 = vld [vmem:[#allocation5 + $0x60] sm:$0xff]  ;;  %p318_p10 = scmp.ne.s32.totalorder %s156_s22, %s317_s23  ;;  %p323_p12 = scmp.lt.s32.totalorder %s317_s23, %s317_s23 }
  0x3c   :  { %221 = vmatprep.subr.bf16.mxu0 %v350_v0  ;;  %v234_v19 = vpack.c.bf16 %v64_v18, %v63_v17  ;;  %v66_v21 = vld [vmem:[#allocation5 + $0x68] sm:$0xff]  ;;  %v67_v23 = vld [vmem:[#allocation5 + $0x70] sm:$0xff]  ;;  %v68_v24 = vld [vmem:[#allocation5 + $0x78] sm:$0xff] }
  0x3d   :  { %v237_v22 = vpack.c.bf16 %v66_v21, %v65_v20  ;;  %v240_v25 = vpack.c.bf16 %v68_v24, %v67_v23  ;;  %v52_v26 = vld [vmem:[#allocation2] sm:$0xff]  ;;  %v165_v27 = vld [vmem:[#allocation7] ss:$0 sm:$0xff]  ;;  %p324_p13 = por %p323_p12, %p322_p11 }
  0x3f   :  { %223 = vmatpush3.bf16.msra.mxu0 %v222_v7  ;;  %p325_p0 = pnand %p324_p13, %p318_p10 }
  0x40   :  { %224 = vmatprep.subr.bf16.mxu0 %v350_v0 }
  0x43   :  { %226 = vmatpush3.bf16.msra.mxu0 %v225_v10 }
  0x44   :  { %227 = vmatprep.subr.bf16.mxu0 %v350_v0 }
  0x47   :  { %229 = vmatpush3.bf16.msra.mxu0 %v228_v13 }
  0x48   :  { %230 = vmatprep.subr.bf16.mxu0 %v350_v0 }
  0x4b   :  { %232 = vmatpush3.bf16.msra.mxu0 %v231_v16 }
  0x4c   :  { %233 = vmatprep.subr.bf16.mxu0 %v350_v0 }
  0x4f   :  { %235 = vmatpush3.bf16.msra.mxu0 %v234_v19 }
  0x50   :  { %236 = vmatprep.subr.bf16.mxu0 %v350_v0 }
  0x53   :  { %238 = vmatpush3.bf16.msra.mxu0 %v237_v22 }
  0x54   :  { %239 = vmatprep.subr.bf16.mxu0 %v350_v0 }
  0x57   :  { %241 = vmatpush3.bf16.msra.mxu0 %v240_v25 }
  0x5a   :  { %216 = vmatmul.mubr.f32.vlgmr.msra.gmra.mrb[0].mxu0 %v52_v26 }
 0x12d   :  { %v142_v28 = vpop.f32.mrb[0].mxu0 }
 0x12e   :  { %v143_v29 = vadd.f32 %v165_v27, %v142_v28  ;;  %v217_v30 = vpop.f32.mrb[1].mxu0 }
 0x130   :  { %v146_v31 = vmax.f32 %v143_v29, 0.0 }
 0x132   :  { %148 = vst.msk [vmem:[#allocation8] sm:$0xff] %vm147_vm1, %v146_v31 }
 0x133   :  { %328 = shalt.err (!%p325_p0)
}
 0x134   :  { %s329_s26 = scalar_lea.hbm %s425_s3, 128 }
 0x135   :  { %p330_p1 = scmp.ne.s32.totalorder %s425_s3, %s329_s26  ;;  %p333_p2 = scmp.lt.u32.totalorder %s329_s26, %s425_s3 }
 0x137   :  { %p335_p3 = pnand %p333_p2, %p330_p1 }
 0x139   :  { %338 = shalt.err (!%p335_p3)
}
 0x13a   :  { %158 = dma.vmem_to_hbm [thread:$0]  %s156_s22, 128, %s425_s3, [#allocation4]  }
 0x13b   :  { %343 = dma.done.wait [#allocation4], 128  }
 0x13c   :  { %344 = vsyncadd [#allocation4], 4294967168 }
 0x13d   :  { %162 = vsyncpa [#allocation3], 1 }
 0x13e   :  { %163 = vsyncpa [#allocation6], 1 }
 0x13f   :  { %164 = vsyncpa [#allocation4], 1 }

</bundles_post_ra>
